<compile_context>
chip_gen: v5e
topology: v5e:2x2
jax: 0.10.0
libtpu: 0.0.40
codegen_flags: <defaults>
</compile_context>

<pallas_src>
import functools

import jax
import jax.numpy as jnp
from jax.experimental import pallas as pl
from jax.experimental.pallas import tpu as pltpu


def _round_up(x, m):
    return (x + m - 1) // m * m


def _vmem_limit_bytes():
    """Scoped-VMEM limit: ~60% of physical capacity (fallback = v7x 64 MiB)."""
    cap = 64 * 1024 * 1024
    try:
        info = pltpu.get_tpu_info()
        cap = int(getattr(info, "vmem_capacity_bytes", cap))
    except Exception:
        pass
    return max(16 * 1024 * 1024, int(cap * 0.6))


def _tile_vmem_bytes(tn, td, bp, x_itemsize):
    lanes = max(_round_up(td, 128), 128)
    x_buf = 2 * tn * lanes * x_itemsize          # double-buffered feature tile
    seg_buf = 2 * 8 * _round_up(tn, 128) * 4     # seg tile (sublane padded)
    acc = 2 * bp * lanes * 4                     # resident f32 accumulator
    tmp = bp * _round_up(tn, 128) * 12           # iota / compare / one-hot temps
    return x_buf + seg_buf + acc + tmp


def _choose_row_tile(n, td, x_itemsize, bp, budget):
    max_tn = _round_up(max(n, 1), 128)
    # Target ~4 MiB of feature bytes per grid step.
    target_rows = (4 * 1024 * 1024) // max(td * x_itemsize, 1)
    tn = min(max_tn, max(128, _round_up(int(target_rows), 128)))
    while tn > 128 and _tile_vmem_bytes(tn, td, bp, x_itemsize) > budget:
        tn = max(128, _round_up(tn // 2, 128))
    return tn


def _choose_col_tile(d):
    """Feature-column tile.  Prefer >=2 lane-dense tiles so the 'parallel' grid
    axis can feed both v7x TensorCores; fall back to the full (unpadded) width
    when D is not a multiple of 128 (no host-side pad of feat)."""
    if d % 128 != 0:
        return d
    if d >= 1024 and d % 512 == 0:
        return 512
    if d >= 512 and d % 256 == 0:
        return 256
    return 128


def _sum_pool_kernel(seg_ref, x_ref, o_ref, *, n_rows, row_tile):
    """seg_ref: (1, TN)  int32 segment ids (-1 marks padded rows)
       x_ref:   (TN, TD) node features in their native dtype
       o_ref:   (Bp, TD) f32 accumulator, resident across the row-tile axis."""
    ri = pl.program_id(1)

    @pl.when(ri == 0)
    def _init():
        o_ref[...] = jnp.zeros_like(o_ref)

    x = x_ref[...]
    if x.dtype == jnp.bfloat16:
        compute_dtype = jnp.bfloat16            # native MXU rate, exact one-hot
    else:
        compute_dtype = jnp.float32
        x = x.astype(jnp.float32)

    # Zero rows past the end of the packed feature tensor (ragged last tile).
    # Must be a select: relying on onehot==0 * garbage could propagate NaN/Inf.
    if n_rows % row_tile != 0:
        row_idx = ri * row_tile + jax.lax.broadcasted_iota(jnp.int32, x.shape, 0)
        x = jnp.where(row_idx < n_rows, x, jnp.zeros_like(x))

    seg = seg_ref[...]                                            # (1, TN)
    bp = o_ref.shape[0]
    rows = jax.lax.broadcasted_iota(jnp.int32, (bp, seg.shape[1]), 0)
    onehot = (rows == seg).astype(compute_dtype)                  # (Bp, TN)

    # Segment-sum of this row tile as one lane-dense MXU matmul (f32 accum).
    o_ref[...] += jnp.dot(onehot, x, preferred_element_type=jnp.float32)


def sum_pooling(feat, lengths, *, row_tile=None):
    """SumPooling forward: out[b] = sum over graph b's node feature rows.

    feat:    (N, D) packed node features (kept in native dtype -- no upcast).
    lengths: (B,) per-graph node counts (graph.batch_num_nodes()); may be a
             device/traced array; must sum to N.
    """
    feat = jnp.asarray(feat)
    n, d = feat.shape
    lengths = jnp.asarray(lengths, dtype=jnp.int32)
    b = int(lengths.shape[0])

    if b == 0 or n == 0:
        return jnp.zeros((b, d), feat.dtype)

    bp = _round_up(b, 8)                        # sublane-aligned output rows
    td = _choose_col_tile(d)
    num_d = d // td
    itemsize = feat.dtype.itemsize

    limit = _vmem_limit_bytes()
    if row_tile is None:
        tn = _choose_row_tile(n, td, itemsize, bp, int(limit * 0.75))
    else:
        tn = max(128, _round_up(int(row_tile), 128))
    num_r = pl.cdiv(n, tn)
    padded_rows = num_r * tn

    # Segment ids (one per node row), padded with -1 so padded rows match no
    # output row.  Built entirely on device -> no host sync, no retrace when
    # only the batch composition changes.
    seg = jnp.repeat(jnp.arange(b, dtype=jnp.int32), lengths,
                     total_repeat_length=padded_rows)
    seg = jnp.where(jnp.arange(padded_rows, dtype=jnp.int32) < n, seg, -1)
    seg = seg.reshape(1, padded_rows)

    kernel = functools.partial(_sum_pool_kernel, n_rows=n, row_tile=tn)
    out = pl.pallas_call(
        kernel,
        out_shape=jax.ShapeDtypeStruct((bp, d), jnp.float32),
        grid=(num_d, num_r),
        in_specs=[
            pl.BlockSpec((1, tn), lambda dj, ri: (0, ri)),      # segment ids
            pl.BlockSpec((tn, td), lambda dj, ri: (ri, dj)),    # feature rows
        ],
        out_specs=pl.BlockSpec((bp, td), lambda dj, ri: (0, dj)),  # resident acc
        compiler_params=pltpu.CompilerParams(
            dimension_semantics=("parallel", "arbitrary"),
            vmem_limit_bytes=limit),
    )(seg, feat)

    return out[:b].astype(feat.dtype)


def reference(feat, lengths):
    """Pure-JAX reference: per-graph (segment) sum."""
    lengths = jnp.asarray(lengths, jnp.int32)
    b = int(lengths.shape[0])
    seg = jnp.repeat(jnp.arange(b, dtype=jnp.int32), lengths,
                     total_repeat_length=feat.shape[0])
    return jax.ops.segment_sum(feat, seg, num_segments=b)


if __name__ == "__main__":
    key = jax.random.PRNGKey(0)
    k1, k2, k3 = jax.random.split(key, 3)

    # Case 1: two small graphs (3 and 4 nodes), feature size 32.
    lengths1 = jnp.array([3, 4], jnp.int32)
    feat1 = jax.random.normal(k1, (7, 32), jnp.float32)
    out1 = jax.block_until_ready(sum_pooling(feat1, lengths1))
    ref1 = reference(feat1, lengths1)
    assert out1.shape == (2, 32)
    assert bool(jnp.allclose(out1, ref1, atol=1e-3, rtol=1e-3)), "case 1 mismatch"

    # Case 2: larger batch (with an empty graph); several row tiles + ragged tail.
    lengths2 = jnp.array([37, 0, 128, 301, 64, 250], jnp.int32)
    feat2 = jax.random.normal(k2, (780, 48), jnp.float32)
    out2 = jax.block_until_ready(sum_pooling(feat2, lengths2, row_tile=256))
    ref2 = reference(feat2, lengths2)
    assert out2.shape == (6, 48)
    assert bool(jnp.allclose(out2, ref2, atol=1e-3, rtol=1e-3)), "case 2 mismatch"

    # Case 3: bf16 features, D = 256 -> two "parallel" feature-column tiles,
    # three row tiles with a ragged tail.
    lengths3 = jnp.array([100, 70, 2, 128], jnp.int32)
    feat3 = jax.random.normal(k3, (300, 256), jnp.float32).astype(jnp.bfloat16)
    out3 = jax.block_until_ready(sum_pooling(feat3, lengths3, row_tile=128))
    ref3 = reference(feat3.astype(jnp.float32), lengths3)
    assert out3.shape == (4, 256)
    assert bool(jnp.allclose(out3.astype(jnp.float32), ref3,
                             atol=1e-2, rtol=1e-2)), "case 3 mismatch"

    print("KERNEL_OK")
</pallas_src>

<mosaic_0001>
module attributes {stable_mosaic.version = 11 : i64} {
  func.func @_sum_pool_kernel(%arg0: i32, %arg1: i32, %arg2: memref<1x128xi32, #tpu.memory_space<vmem>>, %arg3: memref<128x32xf32, #tpu.memory_space<vmem>>, %arg4: memref<8x32xf32, #tpu.memory_space<vmem>>) attributes {dimension_semantics = [#tpu.dimension_semantics<parallel>, #tpu.dimension_semantics<arbitrary>], iteration_bounds = array<i64: 1, 1>, scalar_prefetch = 0 : i64, scratch_operands = 0 : i64, tpu.core_type = #tpu.core_type<tc>, window_params = [{transform_indices = @transform_0, window_bounds = array<i64: 1, 128>}, {transform_indices = @transform_1, window_bounds = array<i64: 128, 32>}, {transform_indices = @transform_2, window_bounds = array<i64: 8, 32>}]} {
    %c0_i32 = arith.constant 0 : i32
    %0 = arith.cmpi eq, %arg1, %c0_i32 : i32
    %1 = arith.extui %0 : i1 to i32
    %c0_i32_0 = arith.constant 0 : i32
    %2 = arith.cmpi ne, %1, %c0_i32_0 : i32
    scf.if %2 {
      %cst_9 = arith.constant 0.000000e+00 : f32
      %22 = vector.broadcast %cst_9 : f32 to vector<8x32xf32>
      %c0_10 = arith.constant 0 : index
      %c0_11 = arith.constant 0 : index
      %23 = vector.load %arg4[%c0_10, %c0_11] : memref<8x32xf32, #tpu.memory_space<vmem>>, vector<8x32xf32>
      tpu.vector_store %arg4[%c0_10, %c0_11], %22 {strides = array<i32>} : memref<8x32xf32, #tpu.memory_space<vmem>>, vector<8x32xf32>,
    } else {
    }
    %c0 = arith.constant 0 : index
    %c0_1 = arith.constant 0 : index
    %3 = vector.load %arg3[%c0, %c0_1] : memref<128x32xf32, #tpu.memory_space<vmem>>, vector<128x32xf32>
    %c128_i32 = arith.constant 128 : i32
    %4 = arith.muli %arg1, %c128_i32 : i32
    %5 = tpu.iota {dimensions = array<i32: 0>} : vector<128x32xi32>
    %6 = vector.broadcast %4 : i32 to vector<128x32xi32>
    %7 = arith.addi %6, %5 : vector<128x32xi32>
    %c7_i32 = arith.constant 7 : i32
    %8 = vector.broadcast %c7_i32 : i32 to vector<128x32xi32>
    %9 = arith.cmpi slt, %7, %8 : vector<128x32xi32>
    %cst = arith.constant 0.000000e+00 : f32
    %10 = vector.broadcast %cst : f32 to vector<128x32xf32>
    %11 = arith.select %9, %3, %10 : vector<128x32xi1>, vector<128x32xf32>
    %c0_2 = arith.constant 0 : index
    %c0_3 = arith.constant 0 : index
    %12 = vector.load %arg2[%c0_2, %c0_3] : memref<1x128xi32, #tpu.memory_space<vmem>>, vector<1x128xi32>
    %13 = tpu.iota {dimensions = array<i32: 0>} : vector<8x128xi32>
    %14 = vector.broadcast %12 : vector<1x128xi32> to vector<8x128xi32>
    %15 = arith.cmpi eq, %13, %14 : vector<8x128xi32>
    %16 = arith.extui %15 : vector<8x128xi1> to vector<8x128xi32>
    %17 = arith.sitofp %16 : vector<8x128xi32> to vector<8x128xf32>
    %c0_4 = arith.constant 0 : index
    %c0_5 = arith.constant 0 : index
    %18 = vector.load %arg4[%c0_4, %c0_5] : memref<8x32xf32, #tpu.memory_space<vmem>>, vector<8x32xf32>
    %cst_6 = arith.constant dense<0.000000e+00> : vector<8x32xf32>
    %19 = tpu.matmul %17, %11, %cst_6 {dimension_numbers = #tpu.dot_dimension_numbers<[1], [0], [0], [1], [0, 0, 1, 1], [], []>} : vector<8x128xf32>, vector<128x32xf32>, vector<8x32xf32> -> vector<8x32xf32>
    %20 = arith.addf %18, %19 : vector<8x32xf32>
    %c0_7 = arith.constant 0 : index
    %c0_8 = arith.constant 0 : index
    %21 = vector.load %arg4[%c0_7, %c0_8] : memref<8x32xf32, #tpu.memory_space<vmem>>, vector<8x32xf32>
    tpu.vector_store %arg4[%c0_7, %c0_8], %20 {strides = array<i32>} : memref<8x32xf32, #tpu.memory_space<vmem>>, vector<8x32xf32>,
    return
  }
  func.func @transform_0(%arg0: i32, %arg1: i32) -> (i32, i32) {
    %c0_i32 = arith.constant 0 : i32
    %c0_i32_0 = arith.constant 0 : i32
    return %c0_i32, %arg1 : i32, i32
  }
  func.func @transform_1(%arg0: i32, %arg1: i32) -> (i32, i32) {
    %c0_i32 = arith.constant 0 : i32
    return %arg1, %arg0 : i32, i32
  }
  func.func @transform_2(%arg0: i32, %arg1: i32) -> (i32, i32) {
    %c0_i32 = arith.constant 0 : i32
    %c0_i32_0 = arith.constant 0 : i32
    return %c0_i32, %arg0 : i32, i32
  }
}

</mosaic_0001>

<bundles_post_ra>
// kernel: tpu_custom_call.1
= control target key start
LH: loop header
LB: loop body
LE: loop exit
PB: predicated region body
PF: predicated region fallthrough
CT: control target
= control target key end

     0   :  { %7 = vsyncpa [#allocation3], 0  ;;  %s300_s0 = inlined_call_operand.hbm [shape: s32[1,128], index: 0, kind: input, shape index: {}]   ;;  %s301_s1 = inlined_call_operand.hbm [shape: f32[7,32], index: 1, kind: input, shape index: {}]   ;;  %s302_s2 = inlined_call_operand.hbm [shape: f32[8,32], index: 2, kind: output, shape index: {}]  }
   0x1   :  { %8 = vsyncpa [#allocation6], 0 }
   0x2   :  { %9 = vsyncpa [#allocation4], 0  ;;  %s15_s11 = sshll.u32 %s300_s0, 4  ;;  %s267_s12 = smov [#allocation2]   ;;  %s16_s11 = int_to_ptr.hbm [resolvable:$true] %s15_s11 }
   0x3   :  { %s17_s13 = sshll.u32 %s267_s12, 4  ;;  %s18_s13 = int_to_ptr.vmem [resolvable:$true] %s17_s13 }
   0x4   :  { %20 = dma.hbm_to_vmem [thread:$0]  %s16_s11, 16, %s18_s13, [#allocation3]  }
   0x5   :  { %24 = vsyncadd [#allocation6], 1920  ;;  %s25_s16 = sshll.u32 %s301_s1, 4  ;;  %s268_s17 = smov [#allocation5]   ;;  %s26_s16 = int_to_ptr.hbm [resolvable:$true] %s25_s16 }
   0x6   :  { %s27_s18 = sshll.u32 %s268_s17, 4  ;;  %s269_s19 = smov 128   ;;  %s28_s18 = int_to_ptr.vmem [resolvable:$true] %s27_s18 }
   0x7   :  { %s270_s20 = smov 8  }
   0x8   :  { %33 = dma.hbm_to_vmem [thread:$0]  %s26_s16, 128, %s28_s18, [#allocation6], %s269_s19, %s269_s19, %s270_s20  }
   0x9   :  { %261 = dma.done.wait [#allocation3], 16  }
   0xa   :  { %262 = vsyncadd [#allocation3], 4294967280 }
   0xb   :  { %263 = dma.done.wait [#allocation6], 2048  }
   0xc   :  { %264 = vsyncadd [#allocation6], 4294965248  ;;  %vm46_vm0 = vcmask 261120   ;;  %v65_v0 = vlaneseq  ;;  %v271_v1 = vmov 0.0   ;;  %v48_v3 = vld [vmem:[#allocation5] sm:$0xff]  ;;  %v272_v5 = vmov 1.0  }
   0xd   :  { %47 = vst.msk [vmem:[#allocation7] sm:$0xff] %vm46_vm0, %v271_v1  ;;  %v188_v4 = vld [vmem:[#allocation2] ss:$0 sm:$0xff]  ;;  %s273_s0 = smov [#allocation7]   ;;  %s167_s23 = sshll.u32 %s302_s2, 4  ;;  %s168_s23 = int_to_ptr.hbm [resolvable:$true] %s167_s23 }
   0xe   :  { %v66_v2 = vshrl.u32 %v65_v0, 7  ;;  %s165_s1 = sshll.u32 %s273_s0, 4  ;;  %s166_s1 = int_to_ptr.vmem [resolvable:$true] %s165_s1 }
  0x10   :  { %vm99_vm1 = vcmp.lt.s32.totalorder %v66_v2, 7  ;;  %vm133_vm2 = vcmp.eq.s32.totalorder %v66_v2, %v188_v4 }
  0x11   :  { %179 = vmatpush.msk.msra.mxu0 %vm99_vm1, %v48_v3 }
  0x12   :  { %180 = vmatmul.msk.f32.vlgmr.msra.gmra.mxu0 %vm133_vm2, %v272_v5 }
  0x14   :  { %v136_v6 = vld [vmem:[#allocation7] sm:$0xff] }
  0x8f   :  { %v154_v7 = vpop.f32.mrf.mxu0 }
  0x90   :  { %v157_v8 = vadd.f32 %v154_v7, %v136_v6 }
  0x92   :  { %159 = vst.msk [vmem:[#allocation7] sm:$0xff] %vm46_vm0, %v157_v8 }
  0x93   :  { %170 = dma.vmem_to_hbm [thread:$0]  %s166_s1, 128, %s168_s23, [#allocation4]  }
  0x94   :  { %265 = dma.done.wait [#allocation4], 128  }
  0x95   :  { %266 = vsyncadd [#allocation4], 4294967168 }
  0x96   :  { %175 = vsyncpa [#allocation3], 1 }
  0x97   :  { %176 = vsyncpa [#allocation6], 1 }
  0x98   :  { %177 = vsyncpa [#allocation4], 1 }

</bundles_post_ra>
